<compile_context>
chip_gen: v6e
topology: v6e:2x2x1
jax: 0.10.0
libtpu: 0.0.40
codegen_flags: <defaults>
</compile_context>

<pallas_src>
import math
from functools import partial

import jax
import jax.numpy as jnp
from jax.experimental import pallas as pl
from jax.experimental.pallas import tpu as pltpu

EPS = 1e-5


def _double_conv_kernel(x_ref,            # (N*H, W*Cin_p)           f32, lane-dense
                        t1_ref,           # (KH*W*Cin_p,  W*Cout_p)  flattened block-Toeplitz
                        g1_ref, be1_ref,  # (1, Cout_p)
                        t2_ref,           # (KH*W*Cout_p, W*Cout_p)
                        g2_ref, be2_ref,  # (1, Cout_p)
                        fold_ref,         # (W*Cout_p, Cout_p)  0/1: pool folded lanes -> chan
                        unfold_ref,       # (Cout_p, W*Cout_p)  0/1: chan -> folded lanes
                        out_ref,          # (N*H, W*Cout_p)          lane-dense output
                        *, H, KH):
    NH = x_ref.shape[0]
    WCo = out_ref.shape[-1]
    cout = g1_ref.shape[-1]
    halo = KH // 2
    inv_m = 1.0 / (NH * (WCo // cout))        # 1 / (N*H*W)

    # Intra-image row index, used to zero the H-halo taps (no staging scratch, no HBM pad).
    h_idx = jax.lax.broadcasted_iota(jnp.int32, (NH, 1), 0) % H
    sel2 = jax.lax.broadcasted_iota(jnp.int32, (2, 1), 0)     # [0; 1] row selector

    def conv(act, t_ref):
        # act: (NH, K).  KH H-taps via XLU sublane roll + per-row mask, lane-concatenated
        # (aligned: K % 128 == 0) into one im2col slab -> a single large-K MXU matmul.
        taps = []
        for ky in range(KH):
            d = ky - halo
            if d == 0:
                taps.append(act)
                continue
            shifted = pltpu.roll(act, shift=(-d) % NH, axis=0)     # shifted[r] = act[r + d]
            valid = (h_idx >= -d) if d < 0 else (h_idx < H - d)
            taps.append(jnp.where(valid, shifted, 0.0))
        slab = jnp.concatenate(taps, axis=-1)                      # (NH, KH*K)
        return jnp.dot(slab, t_ref[...], preferred_element_type=jnp.float32)

    def bn_relu(acc, g_ref, be_ref):
        # Training-mode batch stats, one data pass.  Each tiny MXU matmul carries a stacked
        # (2, .) LHS: [sum; sum_sq] through fold, [scale; shift] through unfold.
        lane_sum = jnp.sum(acc, axis=0, keepdims=True)             # (1, WCo)
        lane_sq = jnp.sum(acc * acc, axis=0, keepdims=True)        # (1, WCo)
        stats_l = jnp.where(sel2 == 0, lane_sum, lane_sq)          # (2, WCo)
        stats_c = jnp.dot(stats_l, fold_ref[...],
                          preferred_element_type=jnp.float32) * inv_m   # (2, Cout)
        mu, ex2 = stats_c[0:1, :], stats_c[1:2, :]
        # TODO(synk): use a two-pass / Welford variance at realistic N*H*W; the one-pass
        # E[x^2]-E[x]^2 form is cancellation-prone in f32 at large sizes.
        var = jnp.maximum(ex2 - mu * mu, 0.0)
        scale_c = g_ref[...] * jax.lax.rsqrt(var + EPS)            # (1, Cout)
        shift_c = be_ref[...] - mu * scale_c
        ss_l = jnp.dot(jnp.where(sel2 == 0, scale_c, shift_c), unfold_ref[...],
                       preferred_element_type=jnp.float32)          # (2, WCo)
        return jnp.maximum(acc * ss_l[0:1, :] + ss_l[1:2, :], 0.0)

    h1 = bn_relu(conv(x_ref[...], t1_ref), g1_ref, be1_ref)        # (NH, WCo)
    out_ref[...] = bn_relu(conv(h1, t2_ref), g2_ref, be2_ref)      # unmasked lane-dense store


def _fold_conv_weight(w_hwio, width):
    """HWIO (KH, KW, Ci, Co) -> (KH*W*Ci, W*Co) flattened banded block-Toeplitz matrix.

    Row block ky, row (wi*Ci + ci), col (wo*Co + co) = w[ky, wi - wo + KW//2, ci, co] when the
    tap is in range, else 0 -- i.e. the 'same' 1-D conv along W (zero padding included).
    """
    kh, kw, ci, co = w_hwio.shape
    wi = jnp.arange(width)[:, None, None]
    wo = jnp.arange(width)[None, :, None]
    kx = jnp.arange(kw)[None, None, :]
    sel = (wi == wo + kx - kw // 2).astype(w_hwio.dtype)           # (W, W, KW)
    t = jnp.einsum('iok,ykcd->yicod', sel, w_hwio)                 # (KH, W, Ci, W, Co)
    return t.reshape(kh * width * ci, width * co)


def _lane_pad_channels(c, width):
    """Smallest c' >= c such that width*c' is a multiple of the 128-lane width."""
    unit = 128 // math.gcd(width, 128)
    return -(-c // unit) * unit


def make_double_conv(params):
    """Fold parameters once per spatial width and return a jitted DoubleConv callable."""
    w1, b1, g1, be1, w2, b2, g2, be2 = params
    # b1/b2 are dropped: a per-channel constant is exactly cancelled by training-mode BN's
    # batch-mean subtraction (restore them if eval-mode running stats are ever used).
    del b1, b2
    kh, kw, cin, cout = w1.shape
    cache = {}                               # width -> kernel-ready device operands

    def _operands(width):
        cin_p = _lane_pad_channels(cin, width)
        cout_p = _lane_pad_channels(cout, width)
        # TODO(synk): for widths that don't divide 128, or once W*C grows past ~1-2K
        # (v7x's 64 MiB VMEM), switch to im2col (KH*KW*Cin, Cout) weights + W tiling
        # instead of channel padding / block-Toeplitz.
        w1p = jnp.zeros((kh, kw, cin_p, cout_p), jnp.float32).at[:, :, :cin, :cout].set(
            w1.astype(jnp.float32))
        w2p = jnp.zeros((kh, kw, cout_p, cout_p), jnp.float32).at[:, :, :cout, :cout].set(
            w2.astype(jnp.float32))
        vec = lambda v: jnp.zeros((1, cout_p), jnp.float32).at[0, :cout].set(
            v.astype(jnp.float32))
        t1 = _fold_conv_weight(w1p, width)                       # (KH*W*Cin_p,  W*Cout_p)
        t2 = _fold_conv_weight(w2p, width)                       # (KH*W*Cout_p, W*Cout_p)
        fold = (jnp.arange(width * cout_p)[:, None] % cout_p
                == jnp.arange(cout_p)[None, :]).astype(jnp.float32)
        return (t1, vec(g1), vec(be1), t2, vec(g2), vec(be2), fold, fold.T)

    @jax.jit
    def _run(x_nchw, t1, g1v, be1v, t2, g2v, be2v, fold, unfold):
        N, Ci, H, W = x_nchw.shape
        cin_p = t1.shape[0] // (kh * W)
        cout_p = fold.shape[1]

        x_nhwc = jnp.transpose(x_nchw, (0, 2, 3, 1)).astype(jnp.float32)
        if cin_p != Ci:
            x_nhwc = jnp.pad(x_nhwc, ((0, 0), (0, 0), (0, 0), (0, cin_p - Ci)))
        x_rows = x_nhwc.reshape(N * H, W * cin_p)                # lane-dense (N*H, W*Cin_p)

        vmem = pl.BlockSpec(memory_space=pltpu.MemorySpace.VMEM)
        # Single un-gridded invocation: everything fits VMEM comfortably at these sizes.
        # TODO(synk): for realistic UNet shapes add a grid over N / row tiles with
        # dimension_semantics=("parallel",) (two-pass BN stats) to use both v7x TensorCores.
        out2d = pl.pallas_call(
            partial(_double_conv_kernel, H=H, KH=kh),
            out_shape=jax.ShapeDtypeStruct((N * H, W * cout_p), jnp.float32),
            in_specs=[vmem] * 9,
            out_specs=vmem,
        )(x_rows, t1, g1v, be1v, t2, g2v, be2v, fold, unfold)

        out = out2d.reshape(N, H, W, cout_p)[..., :cout]
        return jnp.transpose(out, (0, 3, 1, 2))

    def apply(x_nchw):
        W = x_nchw.shape[-1]
        if W not in cache:
            cache[W] = _operands(W)          # built once per width, reused on later calls
        return _run(x_nchw, *cache[W])

    return apply


def _reference(x_nchw, params):
    """Pure-JAX reference with PyTorch (NCHW / OIHW) conventions."""
    w1, b1, g1, be1, w2, b2, g2, be2 = params

    def conv(x, w_hwio, b):
        w_oihw = jnp.transpose(w_hwio, (3, 2, 0, 1))
        y = jax.lax.conv_general_dilated(
            x, w_oihw, window_strides=(1, 1), padding=((1, 1), (1, 1)),
            dimension_numbers=('NCHW', 'OIHW', 'NCHW'))
        return y + b[None, :, None, None]

    def bn_relu(x, g, be):
        mu = jnp.mean(x, axis=(0, 2, 3), keepdims=True)
        var = jnp.mean((x - mu) ** 2, axis=(0, 2, 3), keepdims=True)
        y = g[None, :, None, None] * (x - mu) * jax.lax.rsqrt(var + EPS) \
            + be[None, :, None, None]
        return jnp.maximum(y, 0.0)

    h = bn_relu(conv(x_nchw, w1, b1), g1, be1)
    return bn_relu(conv(h, w2, b2), g2, be2)


def init_params(key, in_channels, out_channels, k=3):
    ks = jax.random.split(key, 8)
    s1 = 0.1
    w1 = jax.random.normal(ks[0], (k, k, in_channels, out_channels), jnp.float32) * s1
    b1 = jax.random.normal(ks[1], (out_channels,), jnp.float32) * s1
    g1 = 1.0 + 0.1 * jax.random.normal(ks[2], (out_channels,), jnp.float32)
    be1 = 0.1 * jax.random.normal(ks[3], (out_channels,), jnp.float32)
    w2 = jax.random.normal(ks[4], (k, k, out_channels, out_channels), jnp.float32) * s1
    b2 = jax.random.normal(ks[5], (out_channels,), jnp.float32) * s1
    g2 = 1.0 + 0.1 * jax.random.normal(ks[6], (out_channels,), jnp.float32)
    be2 = 0.1 * jax.random.normal(ks[7], (out_channels,), jnp.float32)
    return (w1, b1, g1, be1, w2, b2, g2, be2)


if __name__ == "__main__":
    key = jax.random.PRNGKey(0)
    kx, kp = jax.random.split(key)

    N, Cin, Cout, H, W = 2, 4, 8, 16, 16
    x = jax.random.normal(kx, (N, Cin, H, W), jnp.float32)
    params = init_params(kp, Cin, Cout)

    double_conv = make_double_conv(params)
    out = jax.block_until_ready(double_conv(x))

    ref = jax.block_until_ready(_reference(x, params))
    assert out.shape == (N, Cout, H, W)
    assert jnp.allclose(out, ref, atol=1e-4, rtol=1e-4), \
        f"max abs diff {jnp.max(jnp.abs(out - ref))}"

    print("KERNEL_OK")
</pallas_src>

<mosaic_0001>
module attributes {stable_mosaic.version = 11 : i64} {
  func.func @_double_conv_kernel(%arg0: memref<32x128xf32, #tpu.memory_space<vmem>>, %arg1: memref<384x128xf32, #tpu.memory_space<vmem>>, %arg2: memref<1x8xf32, #tpu.memory_space<vmem>>, %arg3: memref<1x8xf32, #tpu.memory_space<vmem>>, %arg4: memref<384x128xf32, #tpu.memory_space<vmem>>, %arg5: memref<1x8xf32, #tpu.memory_space<vmem>>, %arg6: memref<1x8xf32, #tpu.memory_space<vmem>>, %arg7: memref<128x8xf32, #tpu.memory_space<vmem>>, %arg8: memref<8x128xf32, #tpu.memory_space<vmem>>, %arg9: memref<32x128xf32, #tpu.memory_space<vmem>>) attributes {dimension_semantics = [], scalar_prefetch = 0 : i64, scratch_operands = 0 : i64, tpu.core_type = #tpu.core_type<tc>} {
    %0 = tpu.iota {dimensions = array<i32: 0>} : vector<32x1xi32>
    %c16_i32 = arith.constant 16 : i32
    %c0_i32 = arith.constant 0 : i32
    %1 = arith.cmpi eq, %c16_i32, %c0_i32 : i32
    %c1_i32 = arith.constant 1 : i32
    %2 = arith.select %1, %c1_i32, %c16_i32 : i32
    %3 = vector.broadcast %2 : i32 to vector<32x1xi32>
    %4 = arith.remsi %0, %3 : vector<32x1xi32>
    %c0_i32_0 = arith.constant 0 : i32
    %5 = vector.broadcast %c0_i32_0 : i32 to vector<32x1xi32>
    %6 = arith.cmpi ne, %4, %5 : vector<32x1xi32>
    %c0_i32_1 = arith.constant 0 : i32
    %7 = vector.broadcast %c0_i32_1 : i32 to vector<32x1xi32>
    %8 = arith.cmpi slt, %4, %7 : vector<32x1xi32>
    %c0_i32_2 = arith.constant 0 : i32
    %9 = arith.cmpi slt, %2, %c0_i32_2 : i32
    %10 = vector.broadcast %9 : i1 to vector<32x1xi1>
    %11 = vector.broadcast %10 : vector<32x1xi1> to vector<32x1xi1>
    %12 = arith.xori %8, %11 : vector<32x1xi1>
    %13 = arith.andi %12, %6 : vector<32x1xi1>
    %14 = vector.broadcast %2 : i32 to vector<32x1xi32>
    %15 = arith.addi %4, %14 : vector<32x1xi32>
    %16 = arith.select %13, %15, %4 : vector<32x1xi1>, vector<32x1xi32>
    %17 = tpu.iota {dimensions = array<i32: 0>} : vector<2x1xi32>
    %c0 = arith.constant 0 : index
    %c0_3 = arith.constant 0 : index
    %18 = vector.load %arg0[%c0, %c0_3] : memref<32x128xf32, #tpu.memory_space<vmem>>, vector<32x128xf32>
    %c1_i32_4 = arith.constant 1 : i32
    %19 = tpu.dynamic_rotate %18 by %c1_i32_4 dim 0 : vector<32x128xf32>, i32 -> vector<32x128xf32>
    %c1_i32_5 = arith.constant 1 : i32
    %20 = vector.broadcast %c1_i32_5 : i32 to vector<32x1xi32>
    %21 = arith.cmpi sge, %16, %20 : vector<32x1xi32>
    %cst = arith.constant 0.000000e+00 : f32
    %22 = vector.shape_cast %21 : vector<32x1xi1> to vector<32x1xi1>
    %23 = vector.broadcast %22 : vector<32x1xi1> to vector<32x128xi1>
    %24 = vector.broadcast %cst : f32 to vector<32x128xf32>
    %25 = arith.select %23, %19, %24 : vector<32x128xi1>, vector<32x128xf32>
    %c31_i32 = arith.constant 31 : i32
    %26 = tpu.dynamic_rotate %18 by %c31_i32 dim 0 : vector<32x128xf32>, i32 -> vector<32x128xf32>
    %c15_i32 = arith.constant 15 : i32
    %27 = vector.broadcast %c15_i32 : i32 to vector<32x1xi32>
    %28 = arith.cmpi slt, %16, %27 : vector<32x1xi32>
    %cst_6 = arith.constant 0.000000e+00 : f32
    %29 = vector.shape_cast %28 : vector<32x1xi1> to vector<32x1xi1>
    %30 = vector.broadcast %29 : vector<32x1xi1> to vector<32x128xi1>
    %31 = vector.broadcast %cst_6 : f32 to vector<32x128xf32>
    %32 = arith.select %30, %26, %31 : vector<32x128xi1>, vector<32x128xf32>
    %33 = tpu.concatenate %25, %18, %32 in 1 : vector<32x128xf32>, vector<32x128xf32>, vector<32x128xf32> -> vector<32x384xf32>
    %c0_7 = arith.constant 0 : index
    %c0_8 = arith.constant 0 : index
    %34 = vector.load %arg1[%c0_7, %c0_8] : memref<384x128xf32, #tpu.memory_space<vmem>>, vector<384x128xf32>
    %cst_9 = arith.constant dense<0.000000e+00> : vector<32x128xf32>
    %35 = tpu.matmul %33, %34, %cst_9 {dimension_numbers = #tpu.dot_dimension_numbers<[1], [0], [0], [1], [0, 0, 1, 1], [], []>} : vector<32x384xf32>, vector<384x128xf32>, vector<32x128xf32> -> vector<32x128xf32>
    %cst_10 = arith.constant dense<0.000000e+00> : vector<128xf32>
    %36 = vector.multi_reduction <add>, %35, %cst_10 [0] : vector<32x128xf32> to vector<128xf32>
    %37 = vector.shape_cast %36 : vector<128xf32> to vector<1x128xf32>
    %38 = arith.mulf %35, %35 : vector<32x128xf32>
    %cst_11 = arith.constant dense<0.000000e+00> : vector<128xf32>
    %39 = vector.multi_reduction <add>, %38, %cst_11 [0] : vector<32x128xf32> to vector<128xf32>
    %40 = vector.shape_cast %39 : vector<128xf32> to vector<1x128xf32>
    %c0_i32_12 = arith.constant 0 : i32
    %41 = vector.broadcast %c0_i32_12 : i32 to vector<2x1xi32>
    %42 = arith.cmpi eq, %17, %41 : vector<2x1xi32>
    %43 = vector.shape_cast %42 : vector<2x1xi1> to vector<2x1xi1>
    %44 = vector.broadcast %43 : vector<2x1xi1> to vector<2x128xi1>
    %45 = vector.shape_cast %37 : vector<1x128xf32> to vector<1x128xf32>
    %46 = vector.broadcast %45 : vector<1x128xf32> to vector<2x128xf32>
    %47 = vector.shape_cast %40 : vector<1x128xf32> to vector<1x128xf32>
    %48 = vector.broadcast %47 : vector<1x128xf32> to vector<2x128xf32>
    %49 = arith.select %44, %46, %48 : vector<2x128xi1>, vector<2x128xf32>
    %c0_13 = arith.constant 0 : index
    %c0_14 = arith.constant 0 : index
    %50 = vector.load %arg7[%c0_13, %c0_14] : memref<128x8xf32, #tpu.memory_space<vmem>>, vector<128x8xf32>
    %cst_15 = arith.constant dense<0.000000e+00> : vector<2x8xf32>
    %51 = tpu.matmul %49, %50, %cst_15 {dimension_numbers = #tpu.dot_dimension_numbers<[1], [0], [0], [1], [0, 0, 1, 1], [], []>} : vector<2x128xf32>, vector<128x8xf32>, vector<2x8xf32> -> vector<2x8xf32>
    %cst_16 = arith.constant 0.001953125 : f32
    %52 = vector.broadcast %cst_16 : f32 to vector<2x8xf32>
    %53 = arith.mulf %51, %52 : vector<2x8xf32>
    %54 = vector.extract_strided_slice %53 {offsets = [0, 0], sizes = [1, 8], strides = [1, 1]} : vector<2x8xf32> to vector<1x8xf32>
    %55 = vector.extract_strided_slice %53 {offsets = [1, 0], sizes = [1, 8], strides = [1, 1]} : vector<2x8xf32> to vector<1x8xf32>
    %56 = arith.mulf %54, %54 : vector<1x8xf32>
    %57 = arith.subf %55, %56 : vector<1x8xf32>
    %cst_17 = arith.constant 0.000000e+00 : f32
    %58 = vector.broadcast %cst_17 : f32 to vector<1x8xf32>
    %59 = arith.maximumf %57, %58 : vector<1x8xf32>
    %c0_18 = arith.constant 0 : index
    %c0_19 = arith.constant 0 : index
    %60 = vector.load %arg2[%c0_18, %c0_19] : memref<1x8xf32, #tpu.memory_space<vmem>>, vector<1x8xf32>
    %cst_20 = arith.constant 9.99999974E-6 : f32
    %61 = vector.broadcast %cst_20 : f32 to vector<1x8xf32>
    %62 = arith.addf %59, %61 : vector<1x8xf32>
    %63 = math.rsqrt %62 : vector<1x8xf32>
    %64 = arith.mulf %60, %63 : vector<1x8xf32>
    %c0_21 = arith.constant 0 : index
    %c0_22 = arith.constant 0 : index
    %65 = vector.load %arg3[%c0_21, %c0_22] : memref<1x8xf32, #tpu.memory_space<vmem>>, vector<1x8xf32>
    %66 = arith.mulf %54, %64 : vector<1x8xf32>
    %67 = arith.subf %65, %66 : vector<1x8xf32>
    %c0_i32_23 = arith.constant 0 : i32
    %68 = vector.broadcast %c0_i32_23 : i32 to vector<2x1xi32>
    %69 = arith.cmpi eq, %17, %68 : vector<2x1xi32>
    %70 = vector.shape_cast %69 : vector<2x1xi1> to vector<2x1xi1>
    %71 = vector.broadcast %70 : vector<2x1xi1> to vector<2x8xi1>
    %72 = vector.shape_cast %64 : vector<1x8xf32> to vector<1x8xf32>
    %73 = vector.broadcast %72 : vector<1x8xf32> to vector<2x8xf32>
    %74 = vector.shape_cast %67 : vector<1x8xf32> to vector<1x8xf32>
    %75 = vector.broadcast %74 : vector<1x8xf32> to vector<2x8xf32>
    %76 = arith.select %71, %73, %75 : vector<2x8xi1>, vector<2x8xf32>
    %c0_24 = arith.constant 0 : index
    %c0_25 = arith.constant 0 : index
    %77 = vector.load %arg8[%c0_24, %c0_25] : memref<8x128xf32, #tpu.memory_space<vmem>>, vector<8x128xf32>
    %cst_26 = arith.constant dense<0.000000e+00> : vector<2x128xf32>
    %78 = tpu.matmul %76, %77, %cst_26 {dimension_numbers = #tpu.dot_dimension_numbers<[1], [0], [0], [1], [0, 0, 1, 1], [], []>} : vector<2x8xf32>, vector<8x128xf32>, vector<2x128xf32> -> vector<2x128xf32>
    %79 = vector.extract_strided_slice %78 {offsets = [0, 0], sizes = [1, 128], strides = [1, 1]} : vector<2x128xf32> to vector<1x128xf32>
    %80 = vector.broadcast %79 : vector<1x128xf32> to vector<32x128xf32>
    %81 = arith.mulf %35, %80 : vector<32x128xf32>
    %82 = vector.extract_strided_slice %78 {offsets = [1, 0], sizes = [1, 128], strides = [1, 1]} : vector<2x128xf32> to vector<1x128xf32>
    %83 = vector.broadcast %82 : vector<1x128xf32> to vector<32x128xf32>
    %84 = arith.addf %81, %83 : vector<32x128xf32>
    %cst_27 = arith.constant 0.000000e+00 : f32
    %85 = vector.broadcast %cst_27 : f32 to vector<32x128xf32>
    %86 = arith.maximumf %84, %85 : vector<32x128xf32>
    %c1_i32_28 = arith.constant 1 : i32
    %87 = tpu.dynamic_rotate %86 by %c1_i32_28 dim 0 : vector<32x128xf32>, i32 -> vector<32x128xf32>
    %c1_i32_29 = arith.constant 1 : i32
    %88 = vector.broadcast %c1_i32_29 : i32 to vector<32x1xi32>
    %89 = arith.cmpi sge, %16, %88 : vector<32x1xi32>
    %cst_30 = arith.constant 0.000000e+00 : f32
    %90 = vector.shape_cast %89 : vector<32x1xi1> to vector<32x1xi1>
    %91 = vector.broadcast %90 : vector<32x1xi1> to vector<32x128xi1>
    %92 = vector.broadcast %cst_30 : f32 to vector<32x128xf32>
    %93 = arith.select %91, %87, %92 : vector<32x128xi1>, vector<32x128xf32>
    %c31_i32_31 = arith.constant 31 : i32
    %94 = tpu.dynamic_rotate %86 by %c31_i32_31 dim 0 : vector<32x128xf32>, i32 -> vector<32x128xf32>
    %c15_i32_32 = arith.constant 15 : i32
    %95 = vector.broadcast %c15_i32_32 : i32 to vector<32x1xi32>
    %96 = arith.cmpi slt, %16, %95 : vector<32x1xi32>
    %cst_33 = arith.constant 0.000000e+00 : f32
    %97 = vector.shape_cast %96 : vector<32x1xi1> to vector<32x1xi1>
    %98 = vector.broadcast %97 : vector<32x1xi1> to vector<32x128xi1>
    %99 = vector.broadcast %cst_33 : f32 to vector<32x128xf32>
    %100 = arith.select %98, %94, %99 : vector<32x128xi1>, vector<32x128xf32>
    %101 = tpu.concatenate %93, %86, %100 in 1 : vector<32x128xf32>, vector<32x128xf32>, vector<32x128xf32> -> vector<32x384xf32>
    %c0_34 = arith.constant 0 : index
    %c0_35 = arith.constant 0 : index
    %102 = vector.load %arg4[%c0_34, %c0_35] : memref<384x128xf32, #tpu.memory_space<vmem>>, vector<384x128xf32>
    %cst_36 = arith.constant dense<0.000000e+00> : vector<32x128xf32>
    %103 = tpu.matmul %101, %102, %cst_36 {dimension_numbers = #tpu.dot_dimension_numbers<[1], [0], [0], [1], [0, 0, 1, 1], [], []>} : vector<32x384xf32>, vector<384x128xf32>, vector<32x128xf32> -> vector<32x128xf32>
    %cst_37 = arith.constant dense<0.000000e+00> : vector<128xf32>
    %104 = vector.multi_reduction <add>, %103, %cst_37 [0] : vector<32x128xf32> to vector<128xf32>
    %105 = vector.shape_cast %104 : vector<128xf32> to vector<1x128xf32>
    %106 = arith.mulf %103, %103 : vector<32x128xf32>
    %cst_38 = arith.constant dense<0.000000e+00> : vector<128xf32>
    %107 = vector.multi_reduction <add>, %106, %cst_38 [0] : vector<32x128xf32> to vector<128xf32>
    %108 = vector.shape_cast %107 : vector<128xf32> to vector<1x128xf32>
    %c0_i32_39 = arith.constant 0 : i32
    %109 = vector.broadcast %c0_i32_39 : i32 to vector<2x1xi32>
    %110 = arith.cmpi eq, %17, %109 : vector<2x1xi32>
    %111 = vector.shape_cast %110 : vector<2x1xi1> to vector<2x1xi1>
    %112 = vector.broadcast %111 : vector<2x1xi1> to vector<2x128xi1>
    %113 = vector.shape_cast %105 : vector<1x128xf32> to vector<1x128xf32>
    %114 = vector.broadcast %113 : vector<1x128xf32> to vector<2x128xf32>
    %115 = vector.shape_cast %108 : vector<1x128xf32> to vector<1x128xf32>
    %116 = vector.broadcast %115 : vector<1x128xf32> to vector<2x128xf32>
    %117 = arith.select %112, %114, %116 : vector<2x128xi1>, vector<2x128xf32>
    %c0_40 = arith.constant 0 : index
    %c0_41 = arith.constant 0 : index
    %118 = vector.load %arg7[%c0_40, %c0_41] : memref<128x8xf32, #tpu.memory_space<vmem>>, vector<128x8xf32>
    %cst_42 = arith.constant dense<0.000000e+00> : vector<2x8xf32>
    %119 = tpu.matmul %117, %118, %cst_42 {dimension_numbers = #tpu.dot_dimension_numbers<[1], [0], [0], [1], [0, 0, 1, 1], [], []>} : vector<2x128xf32>, vector<128x8xf32>, vector<2x8xf32> -> vector<2x8xf32>
    %cst_43 = arith.constant 0.001953125 : f32
    %120 = vector.broadcast %cst_43 : f32 to vector<2x8xf32>
    %121 = arith.mulf %119, %120 : vector<2x8xf32>
    %122 = vector.extract_strided_slice %121 {offsets = [0, 0], sizes = [1, 8], strides = [1, 1]} : vector<2x8xf32> to vector<1x8xf32>
    %123 = vector.extract_strided_slice %121 {offsets = [1, 0], sizes = [1, 8], strides = [1, 1]} : vector<2x8xf32> to vector<1x8xf32>
    %124 = arith.mulf %122, %122 : vector<1x8xf32>
    %125 = arith.subf %123, %124 : vector<1x8xf32>
    %cst_44 = arith.constant 0.000000e+00 : f32
    %126 = vector.broadcast %cst_44 : f32 to vector<1x8xf32>
    %127 = arith.maximumf %125, %126 : vector<1x8xf32>
    %c0_45 = arith.constant 0 : index
    %c0_46 = arith.constant 0 : index
    %128 = vector.load %arg5[%c0_45, %c0_46] : memref<1x8xf32, #tpu.memory_space<vmem>>, vector<1x8xf32>
    %cst_47 = arith.constant 9.99999974E-6 : f32
    %129 = vector.broadcast %cst_47 : f32 to vector<1x8xf32>
    %130 = arith.addf %127, %129 : vector<1x8xf32>
    %131 = math.rsqrt %130 : vector<1x8xf32>
    %132 = arith.mulf %128, %131 : vector<1x8xf32>
    %c0_48 = arith.constant 0 : index
    %c0_49 = arith.constant 0 : index
    %133 = vector.load %arg6[%c0_48, %c0_49] : memref<1x8xf32, #tpu.memory_space<vmem>>, vector<1x8xf32>
    %134 = arith.mulf %122, %132 : vector<1x8xf32>
    %135 = arith.subf %133, %134 : vector<1x8xf32>
    %c0_i32_50 = arith.constant 0 : i32
    %136 = vector.broadcast %c0_i32_50 : i32 to vector<2x1xi32>
    %137 = arith.cmpi eq, %17, %136 : vector<2x1xi32>
    %138 = vector.shape_cast %137 : vector<2x1xi1> to vector<2x1xi1>
    %139 = vector.broadcast %138 : vector<2x1xi1> to vector<2x8xi1>
    %140 = vector.shape_cast %132 : vector<1x8xf32> to vector<1x8xf32>
    %141 = vector.broadcast %140 : vector<1x8xf32> to vector<2x8xf32>
    %142 = vector.shape_cast %135 : vector<1x8xf32> to vector<1x8xf32>
    %143 = vector.broadcast %142 : vector<1x8xf32> to vector<2x8xf32>
    %144 = arith.select %139, %141, %143 : vector<2x8xi1>, vector<2x8xf32>
    %c0_51 = arith.constant 0 : index
    %c0_52 = arith.constant 0 : index
    %145 = vector.load %arg8[%c0_51, %c0_52] : memref<8x128xf32, #tpu.memory_space<vmem>>, vector<8x128xf32>
    %cst_53 = arith.constant dense<0.000000e+00> : vector<2x128xf32>
    %146 = tpu.matmul %144, %145, %cst_53 {dimension_numbers = #tpu.dot_dimension_numbers<[1], [0], [0], [1], [0, 0, 1, 1], [], []>} : vector<2x8xf32>, vector<8x128xf32>, vector<2x128xf32> -> vector<2x128xf32>
    %147 = vector.extract_strided_slice %146 {offsets = [0, 0], sizes = [1, 128], strides = [1, 1]} : vector<2x128xf32> to vector<1x128xf32>
    %148 = vector.broadcast %147 : vector<1x128xf32> to vector<32x128xf32>
    %149 = arith.mulf %103, %148 : vector<32x128xf32>
    %150 = vector.extract_strided_slice %146 {offsets = [1, 0], sizes = [1, 128], strides = [1, 1]} : vector<2x128xf32> to vector<1x128xf32>
    %151 = vector.broadcast %150 : vector<1x128xf32> to vector<32x128xf32>
    %152 = arith.addf %149, %151 : vector<32x128xf32>
    %cst_54 = arith.constant 0.000000e+00 : f32
    %153 = vector.broadcast %cst_54 : f32 to vector<32x128xf32>
    %154 = arith.maximumf %152, %153 : vector<32x128xf32>
    %c0_55 = arith.constant 0 : index
    %c0_56 = arith.constant 0 : index
    %155 = vector.load %arg9[%c0_55, %c0_56] : memref<32x128xf32, #tpu.memory_space<vmem>>, vector<32x128xf32>
    tpu.vector_store %arg9[%c0_55, %c0_56], %154 {strides = array<i32>} : memref<32x128xf32, #tpu.memory_space<vmem>>, vector<32x128xf32>,
    return
  }
}

</mosaic_0001>

<bundles_post_ra>
// kernel: _run.1
= control target key start
LH: loop header
LB: loop body
LE: loop exit
PB: predicated region body
PF: predicated region fallthrough
CT: control target
= control target key end

     0   :  { %v32_v28 = vlaneseq  ;;  %vm1428_vm6 = vmmov 0   ;;  %vm514_vm8 = vcmask 64512   ;;  %s2114_s1 = inlined_call_operand.vmem [shape: f32[384,128], index: 1, kind: input, shape index: {}]   ;;  %s2115_s0 = inlined_call_operand.vmem [shape: f32[32,128], index: 0, kind: input, shape index: {}]   ;;  %s2116_s7 = inlined_call_operand.vmem [shape: f32[128,8], index: 7, kind: input, shape index: {}]   ;;  %s2117_s8 = inlined_call_operand.vmem [shape: f32[8,128], index: 8, kind: input, shape index: {}]   ;;  %s2118_s4 = inlined_call_operand.vmem [shape: f32[384,128], index: 4, kind: input, shape index: {}]   ;;  %s2119_s2 = inlined_call_operand.vmem [shape: f32[1,8], index: 2, kind: input, shape index: {}]   ;;  %s2120_s3 = inlined_call_operand.vmem [shape: f32[1,8], index: 3, kind: input, shape index: {}]   ;;  %s2121_s5 = inlined_call_operand.vmem [shape: f32[1,8], index: 5, kind: input, shape index: {}]   ;;  %s2122_s6 = inlined_call_operand.vmem [shape: f32[1,8], index: 6, kind: input, shape index: {}]   ;;  %s2123_s9 = inlined_call_operand.vmem [shape: f32[32,128], index: 9, kind: output, shape index: {}]  }
   0x1   :  { %v170_v0 = vld [vmem:[%s2114_s1 + $0xf8] sm:$0xff]  ;;  %v169_v2 = vld [vmem:[%s2114_s1 + $0xf0] sm:$0xff]  ;;  %v168_v5 = vld [vmem:[%s2114_s1 + $0xe8] sm:$0xff] }
   0x2   :  { %v154_v1 = vld [vmem:[%s2114_s1 + $0x78] sm:$0xff]  ;;  %1098 = vmatprep.subr.mxu0 %v170_v0  ;;  %v153_v4 = vld [vmem:[%s2114_s1 + $0x70] sm:$0xff]  ;;  %v152_v7 = vld [vmem:[%s2114_s1 + $0x68] sm:$0xff]  ;;  %v1582_v35 = vshrl.u32 %v32_v28, 7 }
   0x3   :  { %v186_v3 = vld [vmem:[%s2114_s1 + $0x178] sm:$0xff]  ;;  %1099 = vmatpush3.msra.mxu0 %v154_v1  ;;  %v185_v6 = vld [vmem:[%s2114_s1 + $0x170] sm:$0xff]  ;;  %v184_v8 = vld [vmem:[%s2114_s1 + $0x168] sm:$0xff] }
   0x4   :  { %1264 = vmatprep.subr.mxu1 %v186_v3  ;;  %1100 = vmatprep.subr.mxu0 %v169_v2  ;;  %v167_v9 = vld [vmem:[%s2114_s1 + $0xe0] sm:$0xff]  ;;  %v166_v12 = vld [vmem:[%s2114_s1 + $0xd8] sm:$0xff]  ;;  %v165_v15 = vld [vmem:[%s2114_s1 + $0xd0] sm:$0xff]  ;;  %v34_v45 = vadd.s32 8, %v1582_v35  ;;  %v41_v51 = vand.u32 15, %v1582_v35  ;;  %vm93_vm0 = vcmp.lt.s32.totalorder %v1582_v35, 1 }
   0x5   :  { %1265 = vmatpush3.msra.mxu1 %v186_v3  ;;  %1101 = vmatpush3.msra.mxu0 %v153_v4  ;;  %v151_v10 = vld [vmem:[%s2114_s1 + $0x60] sm:$0xff]  ;;  %v150_v13 = vld [vmem:[%s2114_s1 + $0x58] sm:$0xff]  ;;  %v149_v16 = vld [vmem:[%s2114_s1 + $0x50] sm:$0xff]  ;;  %vm118_vm1 = vcmp.lt.s32.totalorder %v1582_v35, 7  ;;  %v36_v60 = vadd.s32 24, %v1582_v35  ;;  %v35_v3 = vadd.s32 16, %v1582_v35 }
   0x6   :  { %1266 = vmatprep.subr.mxu1 %v185_v6  ;;  %1102 = vmatprep.subr.mxu0 %v168_v5  ;;  %v183_v11 = vld [vmem:[%s2114_s1 + $0x160] sm:$0xff]  ;;  %v182_v14 = vld [vmem:[%s2114_s1 + $0x158] sm:$0xff]  ;;  %v181_v17 = vld [vmem:[%s2114_s1 + $0x150] sm:$0xff]  ;;  %v48_v58 = vand.u32 15, %v34_v45  ;;  %vm1653_vm2 = vcmp.ge.s32.totalorder %v41_v51, 1  ;;  %vm379_vm7 = vcmp.eq.s32.totalorder %v1582_v35, 0 }
   0x7   :  { %1267 = vmatpush3.msra.mxu1 %v185_v6  ;;  %1103 = vmatpush3.msra.mxu0 %v152_v7  ;;  %v164_v18 = vld [vmem:[%s2114_s1 + $0xc8] sm:$0xff]  ;;  %v163_v21 = vld [vmem:[%s2114_s1 + $0xc0] sm:$0xff]  ;;  %v162_v24 = vld [vmem:[%s2114_s1 + $0xb8] sm:$0xff]  ;;  %v62_v7 = vand.u32 15, %v36_v60 }
   0x8   :  { %1268 = vmatprep.subr.mxu1 %v184_v8  ;;  %1104 = vmatprep.subr.mxu0 %v167_v9  ;;  %v148_v19 = vld [vmem:[%s2114_s1 + $0x48] sm:$0xff]  ;;  %v147_v22 = vld [vmem:[%s2114_s1 + $0x40] sm:$0xff]  ;;  %v146_v25 = vld [vmem:[%s2114_s1 + $0x38] sm:$0xff]  ;;  %vm1667_vm3 = vcmp.lt.s32.totalorder %v48_v58, 15 }
   0x9   :  { %1269 = vmatpush3.msra.mxu1 %v184_v8  ;;  %1105 = vmatpush3.msra.mxu0 %v151_v10  ;;  %v180_v20 = vld [vmem:[%s2114_s1 + $0x148] sm:$0xff]  ;;  %v179_v23 = vld [vmem:[%s2114_s1 + $0x140] sm:$0xff]  ;;  %v178_v26 = vld [vmem:[%s2114_s1 + $0x138] sm:$0xff]  ;;  %v55_v10 = vand.u32 15, %v35_v3  ;;  %vm1682_vm4 = vcmp.lt.s32.totalorder %v62_v7, 15 }
   0xa   :  { %1270 = vmatprep.subr.mxu1 %v183_v11  ;;  %1106 = vmatprep.subr.mxu0 %v166_v12  ;;  %v161_v27 = vld [vmem:[%s2114_s1 + $0xb0] sm:$0xff]  ;;  %v160_v31 = vld [vmem:[%s2114_s1 + $0xa8] sm:$0xff]  ;;  %v159_v34 = vld [vmem:[%s2114_s1 + $0xa0] sm:$0xff] }
   0xb   :  { %1271 = vmatpush3.msra.mxu1 %v183_v11  ;;  %1107 = vmatpush3.msra.mxu0 %v150_v13  ;;  %v145_v29 = vld [vmem:[%s2114_s1 + $0x30] sm:$0xff]  ;;  %v144_v32 = vld [vmem:[%s2114_s1 + $0x28] sm:$0xff]  ;;  %v143_v36 = vld [vmem:[%s2114_s1 + $0x20] sm:$0xff]  ;;  %vm1688_vm5 = vcmp.ge.s32.totalorder %v55_v10, 1 }
   0xc   :  { %1272 = vmatprep.subr.mxu1 %v182_v14  ;;  %1108 = vmatprep.subr.mxu0 %v165_v15  ;;  %v177_v30 = vld [vmem:[%s2114_s1 + $0x130] sm:$0xff]  ;;  %v176_v33 = vld [vmem:[%s2114_s1 + $0x128] sm:$0xff]  ;;  %v175_v37 = vld [vmem:[%s2114_s1 + $0x120] sm:$0xff] }
   0xd   :  { %1273 = vmatpush3.msra.mxu1 %v182_v14  ;;  %1109 = vmatpush3.msra.mxu0 %v149_v16  ;;  %v158_v38 = vld [vmem:[%s2114_s1 + $0x98] sm:$0xff]  ;;  %v1602_v41 = vld [vmem:[%s2115_s0] sm:$0xff]  ;;  %v157_v43 = vld [vmem:[%s2114_s1 + $0x90] sm:$0xff] }
   0xe   :  { %1274 = vmatprep.subr.mxu1 %v181_v17  ;;  %1110 = vmatprep.subr.mxu0 %v164_v18  ;;  %v142_v39 = vld [vmem:[%s2114_s1 + $0x18] sm:$0xff]  ;;  %v1615_v44 = vld [vmem:[%s2115_s0 + $0x8] sm:$0xff]  ;;  %v141_v46 = vld [vmem:[%s2114_s1 + $0x10] sm:$0xff]  ;;  %v89_v50 = vrot.slane %v1602_v41, 7  ;;  %v114_v55 = vrot.slane %v1602_v41, 1 }
   0xf   :  { %1275 = vmatpush3.msra.mxu1 %v181_v17  ;;  %1111 = vmatpush3.msra.mxu0 %v148_v19  ;;  %v174_v40 = vld [vmem:[%s2114_s1 + $0x118] sm:$0xff]  ;;  %v173_v47 = vld [vmem:[%s2114_s1 + $0x110] sm:$0xff]  ;;  %v156_v49 = vld [vmem:[%s2114_s1 + $0x88] sm:$0xff]  ;;  %v115_v56 = vrot.slane %v1615_v44, 1  ;;  %v90_v2 = vrot.slane %v1615_v44, 7  ;;  %v1427_v17 = vmov 0.0  }
  0x10   :  { %1276 = vmatprep.subr.mxu1 %v180_v20  ;;  %1112 = vmatprep.subr.mxu0 %v163_v21  ;;  %v1607_v42 = vld [vmem:[%s2115_s0 + $0x18] sm:$0xff]  ;;  %v87_v48 = vld [vmem:[%s2115_s0 + $0x10] sm:$0xff]  ;;  %v140_v53 = vld [vmem:[%s2114_s1 + $0x8] sm:$0xff] }
  0x11   :  { %1277 = vmatpush3.msra.mxu1 %v180_v20  ;;  %1113 = vmatpush3.msra.mxu0 %v147_v22  ;;  %v92_v52 = vrot.slane %v1607_v42, 7  ;;  %v172_v54 = vld [vmem:[%s2114_s1 + $0x108] sm:$0xff]  ;;  %v155_v57 = vld [vmem:[%s2114_s1 + $0x80] sm:$0xff]  ;;  %v116_v59 = vrot.slane %v87_v48, 1  ;;  %v117_v62 = vrot.slane %v1607_v42, 1  ;;  %v121_v4 = vsel %vm118_vm1, %v114_v55, %v115_v56  ;;  %v1703_v18 = vld [vmem:[%s2116_s7 + $0x78] sm:$0xff] }
  0x12   :  { %1278 = vmatprep.subr.mxu1 %v179_v23  ;;  %1114 = vmatprep.subr.mxu0 %v162_v24  ;;  %v139_v61 = vld [vmem:[%s2114_s1] sm:$0xff]  ;;  %v96_v9 = vsel %vm93_vm0, %v89_v50, %v90_v2  ;;  %v91_v11 = vrot.slane %v87_v48, 7  ;;  %v1711_v19 = vld [vmem:[%s2116_s7 + $0x70] sm:$0xff]  ;;  %v1718_v20 = vld [vmem:[%s2116_s7 + $0x68] sm:$0xff] }
  0x13   :  { %1279 = vmatpush3.msra.mxu1 %v179_v23  ;;  %1115 = vmatpush3.msra.mxu0 %v146_v25  ;;  %v97_v63 = vsel %vm93_vm0, %v92_v52, %v89_v50  ;;  %v171_v1 = vld [vmem:[%s2114_s1 + $0x100] sm:$0xff]  ;;  %v120_v5 = vsel %vm118_vm1, %v115_v56, %v116_v59  ;;  %v119_v8 = vsel %vm118_vm1, %v116_v59, %v117_v62  ;;  %v1732_v22 = vld [vmem:[%s2116_s7 + $0x58] sm:$0xff]  ;;  %v1739_v23 = vld [vmem:[%s2116_s7 + $0x50] sm:$0xff] }
  0x14   :  { %1280 = vmatprep.subr.mxu1 %v178_v26  ;;  %1116 = vmatprep.subr.mxu0 %v161_v27  ;;  %v122_v12 = vsel %vm118_vm1, %v117_v62, %v114_v55  ;;  %v95_v14 = vsel %vm93_vm0, %v90_v2, %v91_v11  ;;  %v94_v16 = vsel %vm93_vm0, %v91_v11, %v92_v52  ;;  %v1725_v21 = vld [vmem:[%s2116_s7 + $0x60] sm:$0xff]  ;;  %v1746_v24 = vld [vmem:[%s2116_s7 + $0x48] sm:$0xff]  ;;  %v1767_v27 = vld [vmem:[%s2116_s7 + $0x30] sm:$0xff] }
  0x15   :  { %1281 = vmatpush3.msra.mxu1 %v178_v26  ;;  %1117 = vmatpush3.msra.mxu0 %v145_v29  ;;  %v1753_v25 = vld [vmem:[%s2116_s7 + $0x40] sm:$0xff]  ;;  %v1760_v26 = vld [vmem:[%s2116_s7 + $0x38] sm:$0xff]  ;;  %v1774_v28 = vld [vmem:[%s2116_s7 + $0x28] sm:$0xff] }
  0x16   :  { %1282 = vmatprep.subr.mxu1 %v177_v30  ;;  %1118 = vmatprep.subr.mxu0 %v160_v31  ;;  %v1781_v29 = vld [vmem:[%s2116_s7 + $0x20] sm:$0xff]  ;;  %v1793_v31 = vld [vmem:[%s2116_s7 + $0x10] sm:$0xff] }
  0x17   :  { %1283 = vmatpush3.msra.mxu1 %v177_v30  ;;  %1119 = vmatpush3.msra.mxu0 %v144_v32  ;;  %v1787_v30 = vld [vmem:[%s2116_s7 + $0x18] sm:$0xff]  ;;  %v1804_v32 = vld [vmem:[%s2116_s7 + $0x8] sm:$0xff] }
  0x18   :  { %1284 = vmatprep.subr.mxu1 %v176_v33  ;;  %1120 = vmatprep.subr.mxu0 %v159_v34 }
  0x19   :  { %1285 = vmatpush3.msra.mxu1 %v176_v33  ;;  %1121 = vmatpush3.msra.mxu0 %v143_v36  ;;  %v1811_v33 = vld [vmem:[%s2116_s7] sm:$0xff] }
  0x1a   :  { %1286 = vmatprep.subr.mxu1 %v175_v37  ;;  %1122 = vmatprep.subr.mxu0 %v158_v38 }
  0x1b   :  { %1287 = vmatpush3.msra.mxu1 %v175_v37  ;;  %1123 = vmatpush3.msra.mxu0 %v142_v39 }
  0x1c   :  { %1288 = vmatprep.subr.mxu1 %v174_v40  ;;  %1124 = vmatprep.subr.mxu0 %v157_v43 }
  0x1d   :  { %1289 = vmatpush3.msra.mxu1 %v174_v40  ;;  %1125 = vmatpush3.msra.mxu0 %v141_v46 }
  0x1e   :  { %1290 = vmatprep.subr.mxu1 %v173_v47  ;;  %1126 = vmatprep.subr.mxu0 %v156_v49 }
  0x1f   :  { %1291 = vmatpush3.msra.mxu1 %v173_v47  ;;  %1127 = vmatpush3.msra.mxu0 %v140_v53 }
  0x20   :  { %1292 = vmatprep.subr.mxu1 %v172_v54  ;;  %1128 = vmatprep.subr.mxu0 %v155_v57 }
  0x21   :  { %251 = vmatprep.mubr.f32.mxu0 %v1602_v41  ;;  %1129 = vmatpush3.msra.mxu0 %v139_v61 }
  0x22   :  { %1293 = vmatpush3.msra.mxu1 %v172_v54  ;;  %1088 = vmatmul.mubr.msk.f32.vlgmr.msra.gmra.mxu0 %vm1653_vm2, %v97_v63 }
  0x23   :  { %1294 = vmatprep.subr.mxu1 %v171_v1  ;;  %1296 = vmatprep.mubr.f32.mxu1 %v121_v4 }
  0x24   :  { %1295 = vmatpush3.msra.mxu1 %v171_v1  ;;  %256 = vmatprep.mubr.f32.mxu0 %v1615_v44 }
  0x25   :  { %1297 = vmatmul.mubr.msk.f32.vlgmr.msra.gmra.mxu1 %vm1667_vm3, %v120_v5  ;;  %1302 = vmatprep.subr.mxu0 %v1427_v17 }
  0x26   :  { %1299 = vmatprep.mubr.f32.mxu1 %v119_v8  ;;  %257 = vmatmul.mubr.f32.gmra.mxu0 %v96_v9 }
  0x27   :  { %261 = vmatprep.mubr.f32.mxu0 %v87_v48  ;;  %1337 = vmatprep.subr.mxu1 %v1427_v17 }
  0x28   :  { %1303 = vmatpush3.msra.mxu0 %v1703_v18 }
  0x29   :  { %1300 = vmatmul.mubr.msk.f32.gmra.mxu1 %vm1682_vm4, %v122_v12  ;;  %1304 = vmatprep.subr.mxu0 %v1427_v17 }
  0x2a   :  { %1089 = vmatmul.mubr.msk.f32.gmra.mxu0 %vm1688_vm5, %v95_v14  ;;  %1339 = vmatprep.mubr.msk.f32.mxu1 %vm1428_vm6, %v1427_v17 }
  0x2b   :  { %266 = vmatprep.mubr.f32.mxu0 %v1607_v42  ;;  %1305 = vmatpush3.msra.mxu0 %v1711_v19 }
  0x2c   :  { %1306 = vmatprep.subr.mxu0 %v1427_v17 }
  0x2d   :  { %1307 = vmatpush3.msra.mxu0 %v1718_v20 }
  0x2e   :  { %267 = vmatmul.mubr.f32.gmra.mxu0 %v94_v16  ;;  %1308 = vmatprep.subr.mxu0 %v1427_v17 }
  0x2f   :  { %1309 = vmatpush3.msra.mxu0 %v1725_v21  ;;  %1334 = vmatprep.mubr.msk.f32.mxu0 %vm1428_vm6, %v1427_v17 }
  0x30   :  { %1310 = vmatprep.subr.mxu0 %v1427_v17 }
  0x31   :  { %1311 = vmatpush3.msra.mxu0 %v1732_v22 }
  0x32   :  { %1312 = vmatprep.subr.mxu0 %v1427_v17 }
  0x33   :  { %1313 = vmatpush3.msra.mxu0 %v1739_v23 }
  0x34   :  { %1314 = vmatprep.subr.mxu0 %v1427_v17 }
  0x35   :  { %1315 = vmatpush3.msra.mxu0 %v1746_v24 }
  0x36   :  { %1316 = vmatprep.subr.mxu0 %v1427_v17 }
  0x37   :  { %1317 = vmatpush3.msra.mxu0 %v1753_v25 }
  0x38   :  { %1318 = vmatprep.subr.mxu0 %v1427_v17 }
  0x39   :  { %1319 = vmatpush3.msra.mxu0 %v1760_v26 }
  0x3a   :  { %1320 = vmatprep.subr.mxu0 %v1427_v17 }
  0x3b   :  { %1321 = vmatpush3.msra.mxu0 %v1767_v27 }
  0x3c   :  { %1322 = vmatprep.subr.mxu0 %v1427_v17 }
  0x3d   :  { %1323 = vmatpush3.msra.mxu0 %v1774_v28 }
  0x3e   :  { %1324 = vmatprep.subr.mxu0 %v1427_v17 }
  0x3f   :  { %1325 = vmatpush3.msra.mxu0 %v1781_v29 }
  0x40   :  { %1326 = vmatprep.subr.mxu0 %v1427_v17 }
  0x41   :  { %1327 = vmatpush3.msra.mxu0 %v1787_v30 }
  0x42   :  { %1328 = vmatprep.subr.mxu0 %v1427_v17 }
  0x43   :  { %1329 = vmatpush3.msra.mxu0 %v1793_v31 }
  0x44   :  { %1330 = vmatprep.subr.mxu0 %v1427_v17 }
  0x45   :  { %1331 = vmatpush3.msra.mxu0 %v1804_v32 }
  0x46   :  { %1332 = vmatprep.subr.mxu0 %v1427_v17 }
  0x47   :  { %1333 = vmatpush3.msra.mxu0 %v1811_v33 }
  0xe2   :  { %v1130_v34 = vpop.f32.mrf.mxu0 }
  0xe4   :  { %v1131_v36 = vpop.f32.mrf.mxu0 }
  0xe5   :  { %v1298_v37 = vpop.f32.mrf.mxu1  ;;  %v1132_v42 = vadd.f32 %v1131_v36, %v1130_v34  ;;  %v1842_v36 = vld [vmem:[%s2117_s8] sm:$0xff] }
  0xe6   :  { %v1133_v38 = vpop.f32.mrf.mxu0  ;;  %1338 = vmatpush3.msra.mxu1 %v1842_v36 }
  0xe7   :  { %v338_v39 = vpop.f32.mrf.mxu1 }
  0xe8   :  { %v1134_v40 = vpop.f32.mrf.mxu0  ;;  %v1818_v48 = vadd.f32 %v1132_v42, %v338_v39  ;;  %v678_v39 = vld [vmem:[%s2118_s4 + $0x170] sm:$0xff]  ;;  %v675_v42 = vld [vmem:[%s2118_s4 + $0x158] sm:$0xff] }
  0xe9   :  { %v1301_v41 = vpop.f32.mrf.mxu1  ;;  %v1135_v43 = vadd.f32 %v1134_v40, %v1133_v38  ;;  %v679_v38 = vld [vmem:[%s2118_s4 + $0x178] sm:$0xff]  ;;  %v677_v40 = vld [vmem:[%s2118_s4 + $0x168] sm:$0xff] }
  0xea   :  { %v1136_v44 = vpop.f32.mrf.mxu0  ;;  %v366_v54 = vmul.f32 %v1818_v48, %v1818_v48  ;;  %1342 = vmatprep.subr.mxu0 %v679_v38 }
  0xeb   :  { %v1816_v45 = vadd.f32 %v1298_v37, %v1135_v43  ;;  %v348_v47 = vpop.f32.mrf.mxu1  ;;  %v663_v37 = vld [vmem:[%s2118_s4 + $0xf8] sm:$0xff]  ;;  %v674_v43 = vld [vmem:[%s2118_s4 + $0x150] sm:$0xff] }
  0xec   :  { %v1137_v46 = vpop.f32.mrf.mxu0  ;;  %1181 = vmatprep.subr.mxu1 %v663_v37  ;;  %v662_v37 = vld [vmem:[%s2118_s4 + $0xf0] sm:$0xff] }
  0xed   :  { %v1138_v49 = vadd.f32 %v1137_v46, %v1136_v44  ;;  %v367_v51 = vmul.f32 %v1816_v45, %v1816_v45  ;;  %v357_v55 = vadd.f32 %v1816_v45, %v1818_v48  ;;  %v673_v44 = vld [vmem:[%s2118_s4 + $0x148] sm:$0xff]  ;;  %v672_v46 = vld [vmem:[%s2118_s4 + $0x140] sm:$0xff] }
  0xee   :  { %v1139_v50 = vpop.f32.mrf.mxu0 }
  0xef   :  { %v1822_v52 = vadd.f32 %v1138_v49, %v348_v47  ;;  %v370_v59 = vadd.f32 %v367_v51, %v366_v54  ;;  %v671_v47 = vld [vmem:[%s2118_s4 + $0x138] sm:$0xff]  ;;  %v670_v49 = vld [vmem:[%s2118_s4 + $0x130] sm:$0xff] }
  0xf0   :  { %v1140_v53 = vpop.f32.mrf.mxu0 }
  0xf1   :  { %v368_v56 = vmul.f32 %v1822_v52, %v1822_v52  ;;  %v1141_v57 = vadd.f32 %v1140_v53, %v1139_v50  ;;  %v358_v58 = vadd.f32 %v357_v55, %v1822_v52 }
  0xf3   :  { %v1831_v60 = vadd.f32 %v1301_v41, %v1141_v57  ;;  %v371_v61 = vadd.f32 %v370_v59, %v368_v56  ;;  %v676_v41 = vld [vmem:[%s2118_s4 + $0x160] sm:$0xff]  ;;  %v1429_v59 = vmov 1966171168  }
  0xf5   :  { %v359_v62 = vadd.f32 %v358_v58, %v1831_v60  ;;  %v369_v63 = vmul.f32 %v1831_v60, %v1831_v60 }
  0xf7   :  { %v360_v1 = vrot.slane %v359_v62, 4  ;;  %v372_v2 = vadd.f32 %v371_v61, %v369_v63  ;;  %v481_v61 = vunpack.c.l.s4 %v1429_v59  ;;  %v637_v59 = vld [vmem:[%s2118_s4 + $0x28] sm:$0xff] }
  0xf9   :  { %v361_v3 = vadd.f32 %v360_v1, %v359_v62  ;;  %v373_v4 = vrot.slane %v372_v2, 4  ;;  %v482_v62 = vunpack.c.0.s8 %v481_v61  ;;  %v669_v61 = vld [vmem:[%s2118_s4 + $0x128] sm:$0xff] }
  0xfb   :  { %v362_v5 = vrot.slane %v361_v3, 2  ;;  %v374_v7 = vadd.f32 %v373_v4, %v372_v2  ;;  %v1879_v63 = vsub.s32 %v482_v62, %v1582_v35  ;;  %v476_v4 = vld [vmem:[%s2119_s2] sm:$0x1] }
  0xfc   :  { %v652_v62 = vld [vmem:[%s2118_s4 + $0xa0] sm:$0xff] }
  0xfd   :  { %v363_v8 = vadd.f32 %v362_v5, %v361_v3  ;;  %v375_v9 = vrot.slane %v374_v7, 2 }
  0xff   :  { %v364_v10 = vrot.slane %v363_v8, 1  ;;  %v376_v11 = vadd.f32 %v375_v9, %v374_v7 }
 0x101   :  { %v377_v12 = vrot.slane %v376_v11, 1  ;;  %v365_v14 = vadd.f32 %v364_v10, %v363_v8  ;;  %v497_v8 = vld [vmem:[%s2120_s3] sm:$0x1]  ;;  %v1890_v10 = vsub.s32 0, %v1582_v35 }
 0x103   :  { %v378_v16 = vadd.f32 %v377_v12, %v376_v11 }
 0x105   :  { %v382_v34 = vsel %vm379_vm7, %v365_v14, %v378_v16  ;;  %v647_v16 = vld [vmem:[%s2118_s4 + $0x78] sm:$0xff] }
 0x106   :  { %1335 = vmatmul.mubr.f32.vlgmr.msra.gmra.mxu0 %v382_v34 }
 0x107   :  { %1343 = vmatpush3.msra.mxu0 %v679_v38  ;;  %v646_v38 = vld [vmem:[%s2118_s4 + $0x70] sm:$0xff] }
 0x108   :  { %1344 = vmatprep.subr.mxu0 %v678_v39 }
 0x109   :  { %1345 = vmatpush3.msra.mxu0 %v678_v39  ;;  %v661_v39 = vld [vmem:[%s2118_s4 + $0xe8] sm:$0xff] }
 0x10a   :  { %1346 = vmatprep.subr.mxu0 %v677_v40 }
 0x10b   :  { %1347 = vmatpush3.msra.mxu0 %v677_v40  ;;  %v645_v40 = vld [vmem:[%s2118_s4 + $0x68] sm:$0xff] }
 0x10c   :  { %1348 = vmatprep.subr.mxu0 %v676_v41 }
 0x10d   :  { %1349 = vmatpush3.msra.mxu0 %v676_v41  ;;  %v660_v41 = vld [vmem:[%s2118_s4 + $0xe0] sm:$0xff] }
 0x10e   :  { %1350 = vmatprep.subr.mxu0 %v675_v42 }
 0x10f   :  { %1351 = vmatpush3.msra.mxu0 %v675_v42  ;;  %v644_v42 = vld [vmem:[%s2118_s4 + $0x60] sm:$0xff] }
 0x110   :  { %1352 = vmatprep.subr.mxu0 %v674_v43 }
 0x111   :  { %1353 = vmatpush3.msra.mxu0 %v674_v43  ;;  %v659_v43 = vld [vmem:[%s2118_s4 + $0xd8] sm:$0xff] }
 0x112   :  { %1354 = vmatprep.subr.mxu0 %v673_v44 }
 0x113   :  { %1355 = vmatpush3.msra.mxu0 %v673_v44  ;;  %v643_v44 = vld [vmem:[%s2118_s4 + $0x58] sm:$0xff] }
 0x114   :  { %1356 = vmatprep.subr.mxu0 %v672_v46 }
 0x115   :  { %1357 = vmatpush3.msra.mxu0 %v672_v46  ;;  %v658_v46 = vld [vmem:[%s2118_s4 + $0xd0] sm:$0xff] }
 0x116   :  { %1358 = vmatprep.subr.mxu0 %v671_v47 }
 0x117   :  { %1359 = vmatpush3.msra.mxu0 %v671_v47  ;;  %v642_v47 = vld [vmem:[%s2118_s4 + $0x50] sm:$0xff] }
 0x118   :  { %1360 = vmatprep.subr.mxu0 %v670_v49 }
 0x119   :  { %1361 = vmatpush3.msra.mxu0 %v670_v49  ;;  %v657_v49 = vld [vmem:[%s2118_s4 + $0xc8] sm:$0xff] }
 0x11a   :  { %1362 = vmatprep.subr.mxu0 %v669_v61 }
 0x11b   :  { %1363 = vmatpush3.msra.mxu0 %v669_v61 }
 0x1c6   :  { %v465_v50 = vpop.f32.mrf.mxu0 }
 0x1c7   :  { %v469_v51 = vmul.f32 0.001953125, %v465_v50  ;;  %v641_v50 = vld [vmem:[%s2118_s4 + $0x48] sm:$0xff] }
 0x1c8   :  { %v1336_v53 = vpop.f32.mrf.mxu0 }
 0x1c9   :  { %v470_v54 = vmul.f32 %v469_v51, %v469_v51  ;;  %v640_v53 = vld [vmem:[%s2118_s4 + $0x40] sm:$0xff] }
 0x1cb   :  { %v472_v55 = vrot.slane %v470_v54, 7  ;;  %v655_v54 = vld [vmem:[%s2118_s4 + $0xb8] sm:$0xff] }
 0x1cd   :  { %v474_v56 = vsub.f32 %v469_v51, %v472_v55  ;;  %v639_v55 = vld [vmem:[%s2118_s4 + $0x38] sm:$0xff] }
 0x1cf   :  { %v475_v57 = vmax.f32 %v474_v56, 0.0  ;;  %v654_v56 = vld [vmem:[%s2118_s4 + $0xb0] sm:$0xff] }
 0x1d1   :  { %v477_v58 = vadd.f32 1e-05, %v475_v57  ;;  %v638_v57 = vld [vmem:[%s2118_s4 + $0x30] sm:$0xff] }
 0x1d3   :  { %1423 = vrsqrt.f32 %v477_v58  ;;  %v653_v58 = vld [vmem:[%s2118_s4 + $0xa8] sm:$0xff] }
 0x1e0   :  { %v1424_v1 = vpop.eup %1423 }
 0x1e1   :  { %v486_v2 = vrot.slane %v1424_v1, %v1879_v63  ;;  %v636_v1 = vld [vmem:[%s2118_s4 + $0x20] sm:$0xff] }
 0x1e3   :  { %v487_v3 = vcombine.high %v486_v2, %v486_v2  ;;  %v668_v2 = vld [vmem:[%s2118_s4 + $0x120] sm:$0xff] }
 0x1e4   :  { %1364 = vmatprep.subr.mxu0 %v668_v2 }
 0x1e5   :  { %v494_v5 = vrot.slane %v487_v3, %v1879_v63  ;;  %v651_v3 = vld [vmem:[%s2118_s4 + $0x98] sm:$0xff]  ;;  %1365 = vmatpush3.msra.mxu0 %v668_v2 }
 0x1e7   :  { %v496_v7 = vmul.f32 %v494_v5, %v476_v4  ;;  %v635_v4 = vld [vmem:[%s2118_s4 + $0x18] sm:$0xff] }
 0x1e8   :  { %v667_v5 = vld [vmem:[%s2118_s4 + $0x118] sm:$0xff] }
 0x1e9   :  { %v498_v9 = vmul.f32 %v496_v7, %v469_v51  ;;  %v504_v12 = vrot.slane %v496_v7, %v1890_v10  ;;  %v656_v51 = vld [vmem:[%s2118_s4 + $0xc0] sm:$0xff]  ;;  %1366 = vmatprep.subr.mxu0 %v667_v5  ;;  %v650_v7 = vld [vmem:[%s2118_s4 + $0x90] sm:$0xff] }
 0x1ea   :  { %1367 = vmatpush3.msra.mxu0 %v667_v5 }
 0x1eb   :  { %v499_v11 = vsub.f32 %v497_v8, %v498_v9  ;;  %v634_v8 = vld [vmem:[%s2118_s4 + $0x10] sm:$0xff] }
 0x1ec   :  { %v666_v9 = vld [vmem:[%s2118_s4 + $0x110] sm:$0xff] }
 0x1ed   :  { %v510_v14 = vrot.slane %v499_v11, %v1890_v10  ;;  %1368 = vmatprep.subr.mxu0 %v666_v9  ;;  %v649_v11 = vld [vmem:[%s2118_s4 + $0x88] sm:$0xff] }
 0x1ee   :  { %1369 = vmatpush3.msra.mxu0 %v666_v9 }
 0x1ef   :  { %v512_v34 = vsel %vm379_vm7, %v504_v12, %v510_v14  ;;  %v633_v12 = vld [vmem:[%s2118_s4 + $0x8] sm:$0xff] }
 0x1f0   :  { %1340 = vmatmul.mubr.msk.f32.vlgmr.msra.gmra.mxu1 %vm514_vm8, %v512_v34  ;;  %v665_v14 = vld [vmem:[%s2118_s4 + $0x108] sm:$0xff]  ;;  %v632_v34 = vld [vmem:[%s2118_s4] sm:$0xff] }
 0x1f1   :  { %1182 = vmatpush3.msra.mxu1 %v647_v16  ;;  %1370 = vmatprep.subr.mxu0 %v665_v14  ;;  %v648_v16 = vld [vmem:[%s2118_s4 + $0x80] sm:$0xff] }
 0x1f2   :  { %1183 = vmatprep.subr.mxu1 %v662_v37  ;;  %v664_v37 = vld [vmem:[%s2118_s4 + $0x100] sm:$0xff]  ;;  %1371 = vmatpush3.msra.mxu0 %v665_v14 }
 0x1f3   :  { %1184 = vmatpush3.msra.mxu1 %v646_v38  ;;  %1372 = vmatprep.subr.mxu0 %v664_v37  ;;  %v598_v38 = vsub.s32 1, %v1582_v35 }
 0x1f4   :  { %1185 = vmatprep.subr.mxu1 %v661_v39  ;;  %1373 = vmatpush3.msra.mxu0 %v664_v37 }
 0x1f5   :  { %1186 = vmatpush3.msra.mxu1 %v645_v40  ;;  %1415 = vmatprep.subr.mxu0 %v1427_v17 }
 0x1f6   :  { %1187 = vmatprep.subr.mxu1 %v660_v41 }
 0x1f7   :  { %1188 = vmatpush3.msra.mxu1 %v644_v42 }
 0x1f8   :  { %1189 = vmatprep.subr.mxu1 %v659_v43 }
 0x1f9   :  { %1190 = vmatpush3.msra.mxu1 %v643_v44 }
 0x1fa   :  { %1191 = vmatprep.subr.mxu1 %v658_v46 }
 0x1fb   :  { %1192 = vmatpush3.msra.mxu1 %v642_v47 }
 0x1fc   :  { %1193 = vmatprep.subr.mxu1 %v657_v49 }
 0x1fd   :  { %1194 = vmatpush3.msra.mxu1 %v641_v50 }
 0x1fe   :  { %1195 = vmatprep.subr.mxu1 %v656_v51 }
 0x1ff   :  { %1196 = vmatpush3.msra.mxu1 %v640_v53 }
 0x200   :  { %1197 = vmatprep.subr.mxu1 %v655_v54 }
 0x201   :  { %1198 = vmatpush3.msra.mxu1 %v639_v55 }
 0x202   :  { %1199 = vmatprep.subr.mxu1 %v654_v56 }
 0x203   :  { %1200 = vmatpush3.msra.mxu1 %v638_v57 }
 0x204   :  { %1201 = vmatprep.subr.mxu1 %v653_v58 }
 0x205   :  { %1202 = vmatpush3.msra.mxu1 %v637_v59 }
 0x206   :  { %1203 = vmatprep.subr.mxu1 %v652_v62 }
 0x207   :  { %1204 = vmatpush3.msra.mxu1 %v636_v1 }
 0x208   :  { %1205 = vmatprep.subr.mxu1 %v651_v3 }
 0x209   :  { %1206 = vmatpush3.msra.mxu1 %v635_v4 }
 0x20a   :  { %1207 = vmatprep.subr.mxu1 %v650_v7 }
 0x20b   :  { %1208 = vmatpush3.msra.mxu1 %v634_v8 }
 0x20c   :  { %1209 = vmatprep.subr.mxu1 %v649_v11 }
 0x20d   :  { %1210 = vmatpush3.msra.mxu1 %v633_v12 }
 0x20e   :  { %1211 = vmatprep.subr.mxu1 %v648_v16 }
 0x20f   :  { %1212 = vmatpush3.msra.mxu1 %v632_v34 }
 0x210   :  { %1380 = vmatprep.subr.mxu1 %v1427_v17 }
 0x2b0   :  { %v584_v39 = vpop.f32.mrf.mxu1 }
 0x2b1   :  { %v591_v40 = vrot.slane %v584_v39, %v1890_v10  ;;  %v599_v41 = vrot.slane %v584_v39, %v598_v38 }
 0x2b2   :  { %v1341_v42 = vpop.f32.mrf.mxu1 }
 0x2b3   :  { %v593_v43 = vmul.f32 %v591_v40, %v1816_v45  ;;  %v594_v44 = vmul.f32 %v591_v40, %v1822_v52  ;;  %v595_v46 = vmul.f32 %v591_v40, %v1831_v60  ;;  %v592_v47 = vmul.f32 %v591_v40, %v1818_v48 }
 0x2b5   :  { %v601_v49 = vadd.f32 %v599_v41, %v593_v43  ;;  %v602_v50 = vadd.f32 %v599_v41, %v594_v44  ;;  %v603_v51 = vadd.f32 %v599_v41, %v595_v46  ;;  %v600_v53 = vadd.f32 %v599_v41, %v592_v47 }
 0x2b7   :  { %v605_v54 = vmax.f32 %v601_v49, 0.0  ;;  %v606_v55 = vmax.f32 %v602_v50, 0.0  ;;  %v607_v56 = vmax.f32 %v603_v51, 0.0  ;;  %v604_v57 = vmax.f32 %v600_v53, 0.0 }
 0x2b9   :  { %v608_v58 = vrot.slane %v604_v57, 7  ;;  %744 = vmatprep.mubr.f32.mxu1 %v604_v57  ;;  %v611_v59 = vrot.slane %v607_v56, 7  ;;  %v620_v61 = vrot.slane %v604_v57, 1  ;;  %v621_v62 = vrot.slane %v605_v54, 1 }
 0x2ba   :  { %v622_v45 = vrot.slane %v606_v55, 1  ;;  %v623_v1 = vrot.slane %v607_v56, 1  ;;  %v609_v60 = vrot.slane %v605_v54, 7  ;;  %v610_v5 = vrot.slane %v606_v55, 7 }
 0x2bb   :  { %v615_v52 = vsel %vm93_vm0, %v611_v59, %v608_v58  ;;  %v626_v48 = vsel %vm118_vm1, %v620_v61, %v621_v62 }
 0x2bc   :  { %1093 = vmatmul.mubr.msk.f32.vlgmr.msra.gmra.mxu1 %vm1653_vm2, %v615_v52  ;;  %1374 = vmatprep.mubr.f32.mxu0 %v626_v48  ;;  %v625_v2 = vsel %vm118_vm1, %v621_v62, %v622_v45  ;;  %v624_v3 = vsel %vm118_vm1, %v622_v45, %v623_v1  ;;  %v614_v4 = vsel %vm93_vm0, %v608_v58, %v609_v60 }
 0x2bd   :  { %749 = vmatprep.mubr.f32.mxu1 %v605_v54  ;;  %1375 = vmatmul.mubr.msk.f32.vlgmr.msra.gmra.mxu0 %vm1667_vm3, %v625_v2  ;;  %v627_v0 = vsel %vm118_vm1, %v623_v1, %v620_v61  ;;  %v613_v6 = vsel %vm93_vm0, %v609_v60, %v610_v5  ;;  %v612_v13 = vsel %vm93_vm0, %v610_v5, %v611_v59 }
 0x2be   :  { %1377 = vmatprep.mubr.f32.mxu0 %v624_v3  ;;  %1381 = vmatpush3.msra.mxu1 %v1703_v18  ;;  %v950_v3 = vld [vmem:[%s2121_s5] sm:$0x1] }
 0x2bf   :  { %1382 = vmatprep.subr.mxu1 %v1427_v17  ;;  %1416 = vmatpush3.msra.mxu0 %v1842_v36 }
 0x2c0   :  { %750 = vmatmul.mubr.f32.gmra.mxu1 %v614_v4 }
 0x2c1   :  { %754 = vmatprep.mubr.f32.mxu1 %v606_v55  ;;  %1378 = vmatmul.mubr.msk.f32.gmra.mxu0 %vm1682_vm4, %v627_v0  ;;  %v971_v0 = vld [vmem:[%s2122_s6] sm:$0x1] }
 0x2c2   :  { %1383 = vmatpush3.msra.mxu1 %v1711_v19  ;;  %1417 = vmatprep.mubr.msk.f32.mxu0 %vm1428_vm6, %v1427_v17 }
 0x2c3   :  { %1384 = vmatprep.subr.mxu1 %v1427_v17 }
 0x2c4   :  { %1094 = vmatmul.mubr.msk.f32.gmra.mxu1 %vm1688_vm5, %v613_v6 }
 0x2c5   :  { %759 = vmatprep.mubr.f32.mxu1 %v607_v56  ;;  %1385 = vmatpush3.msra.mxu1 %v1718_v20 }
 0x2c6   :  { %1386 = vmatprep.subr.mxu1 %v1427_v17 }
 0x2c7   :  { %1387 = vmatpush3.msra.mxu1 %v1725_v21 }
 0x2c8   :  { %760 = vmatmul.mubr.f32.gmra.mxu1 %v612_v13  ;;  %1388 = vmatprep.subr.mxu1 %v1427_v17 }
 0x2c9   :  { %1389 = vmatpush3.msra.mxu1 %v1732_v22  ;;  %1412 = vmatprep.mubr.msk.f32.mxu1 %vm1428_vm6, %v1427_v17 }
 0x2ca   :  { %1390 = vmatprep.subr.mxu1 %v1427_v17 }
 0x2cb   :  { %1391 = vmatpush3.msra.mxu1 %v1739_v23 }
 0x2cc   :  { %1392 = vmatprep.subr.mxu1 %v1427_v17 }
 0x2cd   :  { %1393 = vmatpush3.msra.mxu1 %v1746_v24 }
 0x2ce   :  { %1394 = vmatprep.subr.mxu1 %v1427_v17 }
 0x2cf   :  { %1395 = vmatpush3.msra.mxu1 %v1753_v25 }
 0x2d0   :  { %1396 = vmatprep.subr.mxu1 %v1427_v17 }
 0x2d1   :  { %1397 = vmatpush3.msra.mxu1 %v1760_v26 }
 0x2d2   :  { %1398 = vmatprep.subr.mxu1 %v1427_v17 }
 0x2d3   :  { %1399 = vmatpush3.msra.mxu1 %v1767_v27 }
 0x2d4   :  { %1400 = vmatprep.subr.mxu1 %v1427_v17 }
 0x2d5   :  { %1401 = vmatpush3.msra.mxu1 %v1774_v28 }
 0x2d6   :  { %1402 = vmatprep.subr.mxu1 %v1427_v17 }
 0x2d7   :  { %1403 = vmatpush3.msra.mxu1 %v1781_v29 }
 0x2d8   :  { %1404 = vmatprep.subr.mxu1 %v1427_v17 }
 0x2d9   :  { %1405 = vmatpush3.msra.mxu1 %v1787_v30 }
 0x2da   :  { %1406 = vmatprep.subr.mxu1 %v1427_v17 }
 0x2db   :  { %1407 = vmatpush3.msra.mxu1 %v1793_v31 }
 0x2dc   :  { %1408 = vmatprep.subr.mxu1 %v1427_v17 }
 0x2dd   :  { %1409 = vmatpush3.msra.mxu1 %v1804_v32 }
 0x2de   :  { %1410 = vmatprep.subr.mxu1 %v1427_v17 }
 0x2df   :  { %1411 = vmatpush3.msra.mxu1 %v1811_v33 }
 0x37c   :  { %v1213_v15 = vpop.f32.mrf.mxu1 }
 0x37d   :  { %v1376_v18 = vpop.f32.mrf.mxu0 }
 0x37e   :  { %v1214_v19 = vpop.f32.mrf.mxu1 }
 0x37f   :  { %v831_v20 = vpop.f32.mrf.mxu0  ;;  %v1215_v23 = vadd.f32 %v1214_v19, %v1213_v15 }
 0x380   :  { %v1216_v21 = vpop.f32.mrf.mxu1 }
 0x381   :  { %v1379_v25 = vpop.f32.mrf.mxu0  ;;  %v832_v29 = vadd.f32 %v1215_v23, %v831_v20 }
 0x382   :  { %v1217_v22 = vpop.f32.mrf.mxu1 }
 0x383   :  { %v1218_v24 = vadd.f32 %v1217_v22, %v1216_v21  ;;  %v841_v31 = vpop.f32.mrf.mxu0  ;;  %v859_v7 = vmul.f32 %v832_v29, %v832_v29 }
 0x384   :  { %v1219_v26 = vpop.f32.mrf.mxu1 }
 0x385   :  { %v2078_v27 = vadd.f32 %v1376_v18, %v1218_v24 }
 0x386   :  { %v1220_v28 = vpop.f32.mrf.mxu1 }
 0x387   :  { %v1221_v30 = vadd.f32 %v1220_v28, %v1219_v26  ;;  %v860_v17 = vmul.f32 %v2078_v27, %v2078_v27  ;;  %v850_v8 = vadd.f32 %v2078_v27, %v832_v29 }
 0x388   :  { %v1222_v32 = vpop.f32.mrf.mxu1 }
 0x389   :  { %v842_v33 = vadd.f32 %v1221_v30, %v841_v31  ;;  %v863_v12 = vadd.f32 %v860_v17, %v859_v7 }
 0x38a   :  { %v1223_v36 = vpop.f32.mrf.mxu1 }
 0x38b   :  { %v861_v9 = vmul.f32 %v842_v33, %v842_v33  ;;  %v1224_v11 = vadd.f32 %v1223_v36, %v1222_v32  ;;  %v851_v14 = vadd.f32 %v850_v8, %v842_v33 }
 0x38d   :  { %v847_v16 = vadd.f32 %v1379_v25, %v1224_v11  ;;  %v864_v34 = vadd.f32 %v863_v12, %v861_v9 }
 0x38f   :  { %v852_v37 = vadd.f32 %v851_v14, %v847_v16  ;;  %v862_v39 = vmul.f32 %v847_v16, %v847_v16 }
 0x391   :  { %v853_v40 = vrot.slane %v852_v37, 4  ;;  %v865_v41 = vadd.f32 %v864_v34, %v862_v39 }
 0x393   :  { %v854_v42 = vadd.f32 %v853_v40, %v852_v37  ;;  %v866_v43 = vrot.slane %v865_v41, 4 }
 0x395   :  { %v855_v44 = vrot.slane %v854_v42, 2  ;;  %v867_v46 = vadd.f32 %v866_v43, %v865_v41 }
 0x397   :  { %v856_v47 = vadd.f32 %v855_v44, %v854_v42  ;;  %v868_v49 = vrot.slane %v867_v46, 2 }
 0x399   :  { %v857_v50 = vrot.slane %v856_v47, 1  ;;  %v869_v51 = vadd.f32 %v868_v49, %v867_v46 }
 0x39b   :  { %v870_v53 = vrot.slane %v869_v51, 1  ;;  %v858_v54 = vadd.f32 %v857_v50, %v856_v47 }
 0x39d   :  { %v871_v55 = vadd.f32 %v870_v53, %v869_v51 }
 0x39f   :  { %v872_v56 = vsel %vm379_vm7, %v858_v54, %v871_v55 }
 0x3a0   :  { %1413 = vmatmul.mubr.f32.vlgmr.msra.gmra.mxu1 %v872_v56 }
 0x460   :  { %v939_v57 = vpop.f32.mrf.mxu1 }
 0x461   :  { %v943_v58 = vmul.f32 0.001953125, %v939_v57 }
 0x462   :  { %v1414_v59 = vpop.f32.mrf.mxu1 }
 0x463   :  { %v944_v61 = vmul.f32 %v943_v58, %v943_v58 }
 0x465   :  { %v946_v62 = vrot.slane %v944_v61, 7 }
 0x467   :  { %v948_v45 = vsub.f32 %v943_v58, %v946_v62 }
 0x469   :  { %v949_v1 = vmax.f32 %v948_v45, 0.0 }
 0x46b   :  { %v951_v52 = vadd.f32 1e-05, %v949_v1 }
 0x46d   :  { %1425 = vrsqrt.f32 %v951_v52 }
 0x47a   :  { %v1426_v48 = vpop.eup %1425 }
 0x47b   :  { %v960_v60 = vrot.slane %v1426_v48, %v1879_v63 }
 0x47d   :  { %v961_v2 = vcombine.high %v960_v60, %v960_v60 }
 0x47f   :  { %v968_v4 = vrot.slane %v961_v2, %v1879_v63 }
 0x481   :  { %v970_v5 = vmul.f32 %v968_v4, %v950_v3 }
 0x483   :  { %v972_v6 = vmul.f32 %v970_v5, %v943_v58  ;;  %v978_v15 = vrot.slane %v970_v5, %v1890_v10 }
 0x485   :  { %v973_v13 = vsub.f32 %v971_v0, %v972_v6 }
 0x487   :  { %v984_v18 = vrot.slane %v973_v13, %v1890_v10 }
 0x489   :  { %v986_v19 = vsel %vm379_vm7, %v978_v15, %v984_v18 }
 0x48a   :  { %1418 = vmatmul.mubr.msk.f32.vlgmr.msra.gmra.mxu0 %vm514_vm8, %v986_v19 }
 0x54a   :  { %v1056_v20 = vpop.f32.mrf.mxu0 }
 0x54b   :  { %v1063_v21 = vrot.slane %v1056_v20, %v1890_v10  ;;  %v1071_v63 = vrot.slane %v1056_v20, %v598_v38 }
 0x54c   :  { %v1419_v22 = vpop.f32.mrf.mxu0 }
 0x54d   :  { %v1064_v23 = vmul.f32 %v1063_v21, %v832_v29  ;;  %v1065_v24 = vmul.f32 %v1063_v21, %v2078_v27  ;;  %v1066_v25 = vmul.f32 %v1063_v21, %v842_v33  ;;  %v1067_v26 = vmul.f32 %v1063_v21, %v847_v16 }
 0x54f   :  { %v1072_v28 = vadd.f32 %v1071_v63, %v1064_v23  ;;  %v1073_v30 = vadd.f32 %v1071_v63, %v1065_v24  ;;  %v1074_v31 = vadd.f32 %v1071_v63, %v1066_v25  ;;  %v1075_v32 = vadd.f32 %v1071_v63, %v1067_v26 }
 0x551   :  { %v1076_v17 = vmax.f32 %v1072_v28, 0.0  ;;  %v1077_v36 = vmax.f32 %v1073_v30, 0.0  ;;  %v1078_v7 = vmax.f32 %v1074_v31, 0.0  ;;  %v1079_v8 = vmax.f32 %v1075_v32, 0.0 }
 0x553   :  { %1080 = vst [vmem:[%s2123_s9] sm:$0xff] %v1076_v17  ;;  %1081 = vst [vmem:[%s2123_s9 + $0x8] sm:$0xff] %v1077_v36 }
 0x554   :  { %1082 = vst [vmem:[%s2123_s9 + $0x10] sm:$0xff] %v1078_v7  ;;  %1083 = vst [vmem:[%s2123_s9 + $0x18] sm:$0xff] %v1079_v8 }

</bundles_post_ra>
